<compile_context>
chip_gen: v5e
topology: v5e:2x2
jax: 0.10.0
libtpu: 0.0.40
codegen_flags: <defaults>
</compile_context>

<pallas_src>
import jax
import jax.numpy as jnp
from jax.experimental import pallas as pl
from jax.experimental.pallas import tpu as pltpu


def _round_up(x, m):
    return ((x + m - 1) // m) * m


def critic_kernel(x_ref, w1_ref, b1_ref, w2_ref, b2_ref, w3_ref, b3_ref, o_ref):
    # In-kernel cast f32 -> matmul dtype (bf16); rides in VALU slack under MXU.
    x = x_ref[...].astype(w1_ref.dtype)                         # (tb, D)
    # fc1 + ReLU : MXU matmul, f32 accumulation; bias/ReLU in f32.
    h1 = jnp.dot(x, w1_ref[...], preferred_element_type=jnp.float32) + b1_ref[...]
    h1 = jnp.maximum(h1, 0.0)
    # fc2 + ReLU : cast activations back to the weight dtype for the MXU.
    h2 = jnp.dot(h1.astype(w2_ref.dtype), w2_ref[...],
                 preferred_element_type=jnp.float32) + b2_ref[...]
    h2 = jnp.maximum(h2, 0.0)
    # fc3 (256 -> 1): elementwise mul + lane reduce on VPU/XLU, not an N=1 MXU
    # matmul. w3 is an f32 (1, 256) row broadcast over sublanes.
    v = jnp.sum(h2 * w3_ref[...], axis=-1, keepdims=True) + b3_ref[...]
    o_ref[...] = v.astype(o_ref.dtype)


def prepare_params(params, *, use_bf16=True):
    """One-time cast/reshape of weights for the kernel (hoisted out of the
    per-call hot path). Returns a dict reusable across forward calls."""
    mm_dtype = jnp.bfloat16 if use_bf16 else jnp.float32
    F1 = params["w1"].shape[1]
    F2 = params["w2"].shape[1]
    return {
        "w1": params["w1"].astype(mm_dtype),                     # (D, F1)
        "b1": params["b1"].reshape(1, F1).astype(jnp.float32),   # (1, F1)
        "w2": params["w2"].astype(mm_dtype),                     # (F1, F2)
        "b2": params["b2"].reshape(1, F2).astype(jnp.float32),   # (1, F2)
        "w3": params["w3"].reshape(1, F2).astype(jnp.float32),   # (1, F2) row, VPU path stays f32
        "b3": params["b3"].reshape(1, 1).astype(jnp.float32),    # (1, 1)
    }


def critic_forward(state, prepared, *, block_b=2048):
    """state: (B, D) float32. prepared: output of prepare_params. Returns (B, 1) f32."""
    B, D = state.shape
    w1, b1 = prepared["w1"], prepared["b1"]
    w2, b2 = prepared["w2"], prepared["b2"]
    w3, b3 = prepared["w3"], prepared["b3"]
    F1, F2 = w1.shape[1], w2.shape[1]

    # Batch tile: multiple of 8 sublanes, capped at block_b. When B >= 16 also
    # cap at ceil(B/2) rounded up to 8 so the grid has >= 2 steps (both v7x
    # TensorCores engage via the "parallel" axis; neutral on v5e/v6e).
    tb = min(block_b, _round_up(B, 8))
    if B >= 16:
        tb = min(tb, _round_up(-(-B // 2), 8))
    b_pad = _round_up(B, tb)

    x = state  # stays f32; cast to bf16 happens inside the kernel
    if b_pad != B:
        # Padded rows compute ReLU(bias) garbage independently; sliced off below.
        x = jnp.pad(x, ((0, b_pad - B), (0, 0)))
    grid = (b_pad // tb,)

    const = lambda shape: pl.BlockSpec(shape, lambda i: (0, 0))   # resident across grid

    out = pl.pallas_call(
        critic_kernel,
        out_shape=jax.ShapeDtypeStruct((b_pad, 1), jnp.float32),
        grid=grid,
        in_specs=[
            pl.BlockSpec((tb, D), lambda i: (i, 0)),   # streamed f32 activations
            const((D, F1)), const((1, F1)),            # weights/biases: constant index
            const((F1, F2)), const((1, F2)),           #  -> DMA'd once, stay in VMEM
            const((1, F2)), const((1, 1)),
        ],
        out_specs=pl.BlockSpec((tb, 1), lambda i: (i, 0)),
        compiler_params=pltpu.CompilerParams(
            dimension_semantics=("parallel",),         # megacore-split on v7x
            vmem_limit_bytes=32 * 1024 * 1024,         # covers f32 h1/h2 at tb=2048 on v5e
        ),
    )(x, w1, b1, w2, b2, w3, b3)
    return out[:B]


def init_params(key, input_dim, fc1_dims=256, fc2_dims=256):
    """Deterministic PyTorch-style uniform(-1/sqrt(fan_in), 1/sqrt(fan_in)) init."""
    ks = jax.random.split(key, 6)

    def lin(kw, kb, fan_in, fan_out):
        bound = 1.0 / jnp.sqrt(jnp.float32(fan_in))
        w = jax.random.uniform(kw, (fan_in, fan_out), jnp.float32, -bound, bound)
        b = jax.random.uniform(kb, (1, fan_out), jnp.float32, -bound, bound)
        return w, b

    w1, b1 = lin(ks[0], ks[1], input_dim, fc1_dims)
    w2, b2 = lin(ks[2], ks[3], fc1_dims, fc2_dims)
    w3, b3 = lin(ks[4], ks[5], fc2_dims, 1)
    return {"w1": w1, "b1": b1, "w2": w2, "b2": b2, "w3": w3, "b3": b3}


if __name__ == "__main__":
    key = jax.random.PRNGKey(0)
    k_params, k_state, k_big = jax.random.split(key, 3)

    input_dim = 32                      # input_dims=(32,)
    params = init_params(k_params, input_dim, fc1_dims=256, fc2_dims=256)
    prepared = prepare_params(params)   # one-time bf16 cast / reshape

    fwd = jax.jit(critic_forward)

    # Small batch: single tile, no padding.
    state = jax.random.normal(k_state, (8, input_dim), jnp.float32)
    value = jax.block_until_ready(fwd(state, prepared))

    # Larger batch: exercises the multi-tile grid (>=2 steps), resident-weight
    # and padding paths.
    state_big = jax.random.normal(k_big, (1000, input_dim), jnp.float32)
    value_big = jax.block_until_ready(fwd(state_big, prepared))

    # Pure-JAX f32 reference (same math as the PyTorch nn.Sequential).
    def ref_fwd(x):
        h1 = jnp.maximum(x @ params["w1"] + params["b1"], 0.0)
        h2 = jnp.maximum(h1 @ params["w2"] + params["b2"], 0.0)
        return h2 @ params["w3"] + params["b3"]

    assert value.shape == (8, 1)
    assert value_big.shape == (1000, 1)
    # bf16 matmul operands with f32 accumulation -> allow ~1e-2 slack vs f32 ref.
    assert jnp.allclose(value, ref_fwd(state), atol=2e-2, rtol=2e-2)
    assert jnp.allclose(value_big, ref_fwd(state_big), atol=2e-2, rtol=2e-2)

    # TODO(synk): optimizer (Adam) and checkpoint save/load are training infra,
    # intentionally not part of this forward-pass kernel.
    print("KERNEL_OK")
</pallas_src>

<mosaic_0001>
module attributes {stable_mosaic.version = 11 : i64} {
  func.func @critic_kernel(%arg0: i32, %arg1: memref<8x32xf32, #tpu.memory_space<vmem>>, %arg2: memref<32x256xbf16, #tpu.memory_space<vmem>>, %arg3: memref<1x256xf32, #tpu.memory_space<vmem>>, %arg4: memref<256x256xbf16, #tpu.memory_space<vmem>>, %arg5: memref<1x256xf32, #tpu.memory_space<vmem>>, %arg6: memref<1x256xf32, #tpu.memory_space<vmem>>, %arg7: memref<1x1xf32, #tpu.memory_space<vmem>>, %arg8: memref<8x1xf32, #tpu.memory_space<vmem>>) attributes {dimension_semantics = [#tpu.dimension_semantics<parallel>], iteration_bounds = array<i64: 1>, scalar_prefetch = 0 : i64, scratch_operands = 0 : i64, tpu.core_type = #tpu.core_type<tc>, window_params = [{transform_indices = @transform_0, window_bounds = array<i64: 8, 32>}, {pipeline_mode = #tpu.pipeline_mode<synchronous>, transform_indices = @transform_1, window_bounds = array<i64: 32, 256>}, {pipeline_mode = #tpu.pipeline_mode<synchronous>, transform_indices = @transform_2, window_bounds = array<i64: 1, 256>}, {pipeline_mode = #tpu.pipeline_mode<synchronous>, transform_indices = @transform_3, window_bounds = array<i64: 256, 256>}, {pipeline_mode = #tpu.pipeline_mode<synchronous>, transform_indices = @transform_4, window_bounds = array<i64: 1, 256>}, {pipeline_mode = #tpu.pipeline_mode<synchronous>, transform_indices = @transform_5, window_bounds = array<i64: 1, 256>}, {pipeline_mode = #tpu.pipeline_mode<synchronous>, transform_indices = @transform_6, window_bounds = array<i64: 1, 1>}, {transform_indices = @transform_7, window_bounds = array<i64: 8, 1>}]} {
    %c0 = arith.constant 0 : index
    %c0_0 = arith.constant 0 : index
    %0 = vector.load %arg1[%c0, %c0_0] : memref<8x32xf32, #tpu.memory_space<vmem>>, vector<8x32xf32>
    %1 = arith.truncf %0 : vector<8x32xf32> to vector<8x32xbf16>
    %c0_1 = arith.constant 0 : index
    %c0_2 = arith.constant 0 : index
    %2 = vector.load %arg2[%c0_1, %c0_2] : memref<32x256xbf16, #tpu.memory_space<vmem>>, vector<32x256xbf16>
    %cst = arith.constant dense<0.000000e+00> : vector<8x256xf32>
    %3 = tpu.matmul %1, %2, %cst {dimension_numbers = #tpu.dot_dimension_numbers<[1], [0], [0], [1], [0, 0, 1, 1], [], []>} : vector<8x32xbf16>, vector<32x256xbf16>, vector<8x256xf32> -> vector<8x256xf32>
    %c0_3 = arith.constant 0 : index
    %c0_4 = arith.constant 0 : index
    %4 = vector.load %arg3[%c0_3, %c0_4] : memref<1x256xf32, #tpu.memory_space<vmem>>, vector<1x256xf32>
    %5 = vector.broadcast %4 : vector<1x256xf32> to vector<8x256xf32>
    %6 = arith.addf %3, %5 : vector<8x256xf32>
    %cst_5 = arith.constant 0.000000e+00 : f32
    %7 = vector.broadcast %cst_5 : f32 to vector<8x256xf32>
    %8 = arith.maximumf %6, %7 : vector<8x256xf32>
    %9 = arith.truncf %8 : vector<8x256xf32> to vector<8x256xbf16>
    %c0_6 = arith.constant 0 : index
    %c0_7 = arith.constant 0 : index
    %10 = vector.load %arg4[%c0_6, %c0_7] : memref<256x256xbf16, #tpu.memory_space<vmem>>, vector<256x256xbf16>
    %cst_8 = arith.constant dense<0.000000e+00> : vector<8x256xf32>
    %11 = tpu.matmul %9, %10, %cst_8 {dimension_numbers = #tpu.dot_dimension_numbers<[1], [0], [0], [1], [0, 0, 1, 1], [], []>} : vector<8x256xbf16>, vector<256x256xbf16>, vector<8x256xf32> -> vector<8x256xf32>
    %c0_9 = arith.constant 0 : index
    %c0_10 = arith.constant 0 : index
    %12 = vector.load %arg5[%c0_9, %c0_10] : memref<1x256xf32, #tpu.memory_space<vmem>>, vector<1x256xf32>
    %13 = vector.broadcast %12 : vector<1x256xf32> to vector<8x256xf32>
    %14 = arith.addf %11, %13 : vector<8x256xf32>
    %cst_11 = arith.constant 0.000000e+00 : f32
    %15 = vector.broadcast %cst_11 : f32 to vector<8x256xf32>
    %16 = arith.maximumf %14, %15 : vector<8x256xf32>
    %c0_12 = arith.constant 0 : index
    %c0_13 = arith.constant 0 : index
    %17 = vector.load %arg6[%c0_12, %c0_13] : memref<1x256xf32, #tpu.memory_space<vmem>>, vector<1x256xf32>
    %18 = vector.broadcast %17 : vector<1x256xf32> to vector<8x256xf32>
    %19 = arith.mulf %16, %18 : vector<8x256xf32>
    %cst_14 = arith.constant dense<0.000000e+00> : vector<8xf32>
    %20 = vector.multi_reduction <add>, %19, %cst_14 [1] : vector<8x256xf32> to vector<8xf32>
    %21 = vector.shape_cast %20 : vector<8xf32> to vector<8x1xf32>
    %c0_15 = arith.constant 0 : index
    %c0_16 = arith.constant 0 : index
    %22 = vector.load %arg7[%c0_15, %c0_16] : memref<1x1xf32, #tpu.memory_space<vmem>>, vector<1x1xf32>
    %23 = vector.broadcast %22 : vector<1x1xf32> to vector<8x1xf32>
    %24 = arith.addf %21, %23 : vector<8x1xf32>
    %c0_17 = arith.constant 0 : index
    %c0_18 = arith.constant 0 : index
    %25 = vector.load %arg8[%c0_17, %c0_18] : memref<8x1xf32, #tpu.memory_space<vmem>>, vector<8x1xf32>
    tpu.vector_store %arg8[%c0_17, %c0_18], %24 {strides = array<i32>} : memref<8x1xf32, #tpu.memory_space<vmem>>, vector<8x1xf32>,
    return
  }
  func.func @transform_0(%arg0: i32) -> (i32, i32) {
    %c0_i32 = arith.constant 0 : i32
    %c0_i32_0 = arith.constant 0 : i32
    return %arg0, %c0_i32 : i32, i32
  }
  func.func @transform_1(%arg0: i32) -> (i32, i32) {
    %c0_i32 = arith.constant 0 : i32
    %c0_i32_0 = arith.constant 0 : i32
    %c0_i32_1 = arith.constant 0 : i32
    return %c0_i32, %c0_i32_0 : i32, i32
  }
  func.func @transform_2(%arg0: i32) -> (i32, i32) {
    %c0_i32 = arith.constant 0 : i32
    %c0_i32_0 = arith.constant 0 : i32
    %c0_i32_1 = arith.constant 0 : i32
    return %c0_i32, %c0_i32_0 : i32, i32
  }
  func.func @transform_3(%arg0: i32) -> (i32, i32) {
    %c0_i32 = arith.constant 0 : i32
    %c0_i32_0 = arith.constant 0 : i32
    %c0_i32_1 = arith.constant 0 : i32
    return %c0_i32, %c0_i32_0 : i32, i32
  }
  func.func @transform_4(%arg0: i32) -> (i32, i32) {
    %c0_i32 = arith.constant 0 : i32
    %c0_i32_0 = arith.constant 0 : i32
    %c0_i32_1 = arith.constant 0 : i32
    return %c0_i32, %c0_i32_0 : i32, i32
  }
  func.func @transform_5(%arg0: i32) -> (i32, i32) {
    %c0_i32 = arith.constant 0 : i32
    %c0_i32_0 = arith.constant 0 : i32
    %c0_i32_1 = arith.constant 0 : i32
    return %c0_i32, %c0_i32_0 : i32, i32
  }
  func.func @transform_6(%arg0: i32) -> (i32, i32) {
    %c0_i32 = arith.constant 0 : i32
    %c0_i32_0 = arith.constant 0 : i32
    %c0_i32_1 = arith.constant 0 : i32
    return %c0_i32, %c0_i32_0 : i32, i32
  }
  func.func @transform_7(%arg0: i32) -> (i32, i32) {
    %c0_i32 = arith.constant 0 : i32
    %c0_i32_0 = arith.constant 0 : i32
    return %arg0, %c0_i32 : i32, i32
  }
}

</mosaic_0001>

<bundles_post_ra>
// kernel: critic_forward.1
= control target key start
LH: loop header
LB: loop body
LE: loop exit
PB: predicated region body
PF: predicated region fallthrough
CT: control target
= control target key end

     0   :  { %s794_s0 = inlined_call_operand.hbm [shape: f32[8,32], index: 0, kind: input, shape index: {}]   ;;  %s795_s1 = inlined_call_operand.hbm [shape: bf16[32,256], index: 1, kind: input, shape index: {}]   ;;  %s796_s2 = inlined_call_operand.vmem [shape: f32[1,256], index: 2, kind: input, shape index: {}]   ;;  %s797_s3 = inlined_call_operand.hbm [shape: bf16[256,256], index: 3, kind: input, shape index: {}]   ;;  %s798_s4 = inlined_call_operand.hbm [shape: f32[1,256], index: 4, kind: input, shape index: {}]   ;;  %s799_s5 = inlined_call_operand.vmem [shape: f32[1,256], index: 5, kind: input, shape index: {}]   ;;  %s800_s6 = inlined_call_operand.<no memory space> [shape: f32[1,1], index: 6, kind: input, shape index: {}]   ;;  %s801_s7 = inlined_call_operand.vmem [shape: f32[8,1], index: 7, kind: output, shape index: {}]  }
   0x1   :  { %v12_v0 = vstv %s800_s6 }
   0x2   :  { %13 = vst [vmem:[#allocation2] sm:$0x1] %v12_v0 }
   0x3   :  { %14 = vsyncpa [#allocation4], 0 }
   0x4   :  { %15 = vsyncpa [#allocation6], 0  ;;  %s32_s28 = sshll.u32 %s795_s1, 4  ;;  %s33_s28 = int_to_ptr.hbm [resolvable:$true] %s32_s28 }
   0x5   :  { %16 = vsyncpa [#allocation9], 0  ;;  %s722_s29 = smov [#allocation5]   ;;  %s22_s10 = sshll.u32 %s794_s0, 4  ;;  %s23_s10 = int_to_ptr.hbm [resolvable:$true] %s22_s10 }
   0x6   :  { %s34_s30 = sshll.u32 %s722_s29, 4  ;;  %s723_s11 = smov 128   ;;  %s35_s30 = int_to_ptr.vmem [resolvable:$true] %s34_s30 }
   0x7   :  { %s724_s12 = smov 8   ;;  %s725_s6 = smov [#allocation3]  }
   0x8   :  { %40 = dma.hbm_to_vmem [thread:$0]  %s33_s28, 512, %s35_s30, [#allocation6], %s723_s11, %s723_s11, %s724_s12  }
   0x9   :  { %s24_s13 = sshll.u32 %s725_s6, 4  ;;  %s47_s16 = sshll.u32 %s797_s3, 4  ;;  %s25_s13 = int_to_ptr.vmem [resolvable:$true] %s24_s13  ;;  %s48_s16 = int_to_ptr.hbm [resolvable:$true] %s47_s16 }
   0xa   :  { %27 = dma.hbm_to_vmem [thread:$0]  %s23_s10, 128, %s25_s13, [#allocation4]  }
   0xb   :  { %s61_s18 = sshll.u32 %s798_s4, 4  ;;  %s726_s19 = smov [#allocation7]   ;;  %s62_s18 = int_to_ptr.hbm [resolvable:$true] %s61_s18 }
   0xc   :  { %s49_s20 = sshll.u32 %s726_s19, 4  ;;  %s727_s0 = smov [#allocation8]   ;;  %s50_s20 = int_to_ptr.vmem [resolvable:$true] %s49_s20 }
   0xd   :  { %55 = dma.hbm_to_vmem [thread:$0]  %s48_s16, 4096, %s50_s20, [#allocation6], %s723_s11, %s723_s11, %s724_s12  }
   0xe   :  { %s63_s21 = sshll.u32 %s727_s0, 4  ;;  %s64_s21 = int_to_ptr.vmem [resolvable:$true] %s63_s21 }
   0xf   :  { %66 = dma.hbm_to_vmem [thread:$0]  %s62_s18, 32, %s64_s21, [#allocation9]  }
  0x10   :  { %716 = dma.done.wait [#allocation4], 128  }
  0x11   :  { %717 = vsyncadd [#allocation4], 4294967168 }
  0x12   :  { %718 = dma.done.wait [#allocation6], 4608  }
  0x13   :  { %719 = vsyncadd [#allocation6], 4294962688 }
  0x14   :  { %720 = dma.done.wait [#allocation9], 32  }
  0x15   :  { %721 = vsyncadd [#allocation9], 4294967264  ;;  %v441_v1 = vld [vmem:[#allocation5 + $0x10] sm:$0xf]  ;;  %v580_v2 = vld [vmem:[#allocation5 + $0x14] sm:$0xf0] }
  0x16   :  { %v579_v3 = vld [vmem:[#allocation5 + $0x14] sm:$0xf]  ;;  %v442_v4 = vor.u32 %v580_v2, %v441_v1  ;;  %v443_v5 = vld [vmem:[#allocation5 + $0x18] sm:$0xf0]  ;;  %v433_v6 = vld [vmem:[#allocation5] sm:$0xf] }
  0x17   :  { %v578_v7 = vld [vmem:[#allocation5 + $0x4] sm:$0xf0]  ;;  %v446_v8 = vor.u32 %v579_v3, %v443_v5  ;;  %v577_v9 = vld [vmem:[#allocation5 + $0x4] sm:$0xf]  ;;  %v435_v10 = vld [vmem:[#allocation5 + $0x8] sm:$0xf0] }
  0x18   :  { %v88_v11 = vld [vmem:[#allocation3] sm:$0xff]  ;;  %vm120_vm0 = vcmask 261120   ;;  %130 = vmatpush.bf16.msra.mxu0 %v442_v4  ;;  %v434_v12 = vor.u32 %v578_v7, %v433_v6  ;;  %v507_v13 = vld [vmem:[#allocation7 + $0x70] sm:$0xf]  ;;  %v438_v16 = vor.u32 %v577_v9, %v435_v10  ;;  %v595_v19 = vld [vmem:[#allocation7 + $0x74] sm:$0xf] }
  0x19   :  { %v596_v14 = vld [vmem:[#allocation7 + $0x74] sm:$0xf0]  ;;  %v571_v15 = vld [vmem:[#allocation7 + $0xf0] sm:$0xf]  ;;  %143 = vmatpush.bf16.msra.mxu1 %v446_v8  ;;  %v509_v20 = vld [vmem:[#allocation7 + $0x78] sm:$0xf0]  ;;  %v89_v26 = vpack.c.bf16 %v88_v11, %v88_v11 }
  0x1a   :  { %v508_v17 = vor.u32 %v596_v14, %v507_v13  ;;  %v612_v18 = vld [vmem:[#allocation7 + $0xf4] sm:$0xf0]  ;;  %v512_v22 = vor.u32 %v595_v19, %v509_v20  ;;  %v611_v23 = vld [vmem:[#allocation7 + $0xf4] sm:$0xf]  ;;  %v573_v24 = vld [vmem:[#allocation7 + $0xf8] sm:$0xf0] }
  0x1b   :  { %v572_v21 = vor.u32 %v612_v18, %v571_v15  ;;  %v499_v25 = vld [vmem:[#allocation7 + $0x60] sm:$0xf]  ;;  %v576_v27 = vor.u32 %v611_v23, %v573_v24  ;;  %v594_v28 = vld [vmem:[#allocation7 + $0x64] sm:$0xf0]  ;;  %v593_v33 = vld [vmem:[#allocation7 + $0x64] sm:$0xf] }
  0x1c   :  { %352 = vmatpush.bf16.msra.mxu2 %v508_v17  ;;  %v563_v29 = vld [vmem:[#allocation7 + $0xe0] sm:$0xf]  ;;  %v610_v30 = vld [vmem:[#allocation7 + $0xe4] sm:$0xf0]  ;;  %131 = vmatpush.bf16.msra.mxu0 %v434_v12  ;;  %v500_v31 = vor.u32 %v594_v28, %v499_v25  ;;  %v501_v34 = vld [vmem:[#allocation7 + $0x68] sm:$0xf0] }
  0x1d   :  { %365 = vmatpush.bf16.msra.mxu3 %v572_v21  ;;  %v564_v32 = vor.u32 %v610_v30, %v563_v29  ;;  %v609_v35 = vld [vmem:[#allocation7 + $0xe4] sm:$0xf]  ;;  %144 = vmatpush.bf16.msra.mxu1 %v438_v16  ;;  %v504_v36 = vor.u32 %v593_v33, %v501_v34  ;;  %v565_v37 = vld [vmem:[#allocation7 + $0xe8] sm:$0xf0]  ;;  %v491_v38 = vld [vmem:[#allocation7 + $0x50] sm:$0xf] }
  0x1e   :  { %v592_v39 = vld [vmem:[#allocation7 + $0x54] sm:$0xf0]  ;;  %v568_v40 = vor.u32 %v609_v35, %v565_v37  ;;  %v555_v41 = vld [vmem:[#allocation7 + $0xd0] sm:$0xf]  ;;  %v591_v43 = vld [vmem:[#allocation7 + $0x54] sm:$0xf] }
  0x1f   :  { %v608_v42 = vld [vmem:[#allocation7 + $0xd4] sm:$0xf0]  ;;  %447 = vmatmul.msk.bf16.vlgmr.msra.gmra.mxu0 %vm120_vm0, %v89_v26  ;;  %v492_v44 = vor.u32 %v592_v39, %v491_v38  ;;  %v493_v45 = vld [vmem:[#allocation7 + $0x58] sm:$0xf0]  ;;  %v607_v46 = vld [vmem:[#allocation7 + $0xd4] sm:$0xf] }
  0x20   :  { %378 = vmatpush.bf16.msrb.mxu0 %v512_v22  ;;  %353 = vmatpush.bf16.msra.mxu2 %v500_v31  ;;  %v557_v47 = vld [vmem:[#allocation7 + $0xd8] sm:$0xf0]  ;;  %v556_v48 = vor.u32 %v608_v42, %v555_v41  ;;  %v483_v49 = vld [vmem:[#allocation7 + $0x40] sm:$0xf]  ;;  %v590_v50 = vld [vmem:[#allocation7 + $0x44] sm:$0xf0]  ;;  %v496_v51 = vor.u32 %v591_v43, %v493_v45 }
  0x21   :  { %391 = vmatpush.bf16.msrb.mxu1 %v576_v27  ;;  %366 = vmatpush.bf16.msra.mxu3 %v564_v32  ;;  %v547_v52 = vld [vmem:[#allocation7 + $0xc0] sm:$0xf]  ;;  %v606_v53 = vld [vmem:[#allocation7 + $0xc4] sm:$0xf0]  ;;  %v560_v54 = vor.u32 %v607_v46, %v557_v47  ;;  %v589_v55 = vld [vmem:[#allocation7 + $0x44] sm:$0xf]  ;;  %v484_v57 = vor.u32 %v590_v50, %v483_v49 }
  0x22   :  { %448 = vmatmul.msk.bf16.vlgmr.msra.gmra.mxu1 %vm120_vm0, %v89_v26  ;;  %v485_v56 = vld [vmem:[#allocation7 + $0x48] sm:$0xf0]  ;;  %v605_v58 = vld [vmem:[#allocation7 + $0xc4] sm:$0xf]  ;;  %v548_v60 = vor.u32 %v606_v53, %v547_v52  ;;  %v475_v61 = vld [vmem:[#allocation7 + $0x30] sm:$0xf] }
  0x23   :  { %v549_v59 = vld [vmem:[#allocation7 + $0xc8] sm:$0xf0]  ;;  %v588_v62 = vld [vmem:[#allocation7 + $0x34] sm:$0xf0]  ;;  %v488_v63 = vor.u32 %v589_v55, %v485_v56  ;;  %v539_v0 = vld [vmem:[#allocation7 + $0xb0] sm:$0xf] }
  0x24   :  { %379 = vmatpush.bf16.msrb.mxu0 %v504_v36  ;;  %354 = vmatpush.bf16.msra.mxu2 %v492_v44  ;;  %v604_v1 = vld [vmem:[#allocation7 + $0xb4] sm:$0xf0]  ;;  %v552_v2 = vor.u32 %v605_v58, %v549_v59  ;;  %v587_v3 = vld [vmem:[#allocation7 + $0x34] sm:$0xf]  ;;  %v477_v4 = vld [vmem:[#allocation7 + $0x38] sm:$0xf0]  ;;  %v476_v5 = vor.u32 %v588_v62, %v475_v61 }
  0x25   :  { %392 = vmatpush.bf16.msrb.mxu1 %v568_v40  ;;  %367 = vmatpush.bf16.msra.mxu3 %v556_v48  ;;  %v603_v6 = vld [vmem:[#allocation7 + $0xb4] sm:$0xf]  ;;  %v541_v7 = vld [vmem:[#allocation7 + $0xb8] sm:$0xf0]  ;;  %v540_v8 = vor.u32 %v604_v1, %v539_v0  ;;  %v467_v9 = vld [vmem:[#allocation7 + $0x20] sm:$0xf]  ;;  %v480_v11 = vor.u32 %v587_v3, %v477_v4 }
  0x26   :  { %v586_v10 = vld [vmem:[#allocation7 + $0x24] sm:$0xf0]  ;;  %v531_v12 = vld [vmem:[#allocation7 + $0xa0] sm:$0xf]  ;;  %v544_v14 = vor.u32 %v603_v6, %v541_v7  ;;  %v585_v15 = vld [vmem:[#allocation7 + $0x24] sm:$0xf] }
  0x27   :  { %v602_v13 = vld [vmem:[#allocation7 + $0xa4] sm:$0xf0]  ;;  %v469_v16 = vld [vmem:[#allocation7 + $0x28] sm:$0xf0]  ;;  %v468_v17 = vor.u32 %v586_v10, %v467_v9  ;;  %v601_v18 = vld [vmem:[#allocation7 + $0xa4] sm:$0xf] }
  0x28   :  { %380 = vmatpush.bf16.msrb.mxu0 %v496_v51  ;;  %355 = vmatpush.bf16.msra.mxu2 %v484_v57  ;;  %v533_v19 = vld [vmem:[#allocation7 + $0xa8] sm:$0xf0]  ;;  %v532_v20 = vor.u32 %v602_v13, %v531_v12  ;;  %v472_v21 = vor.u32 %v585_v15, %v469_v16  ;;  %v459_v23 = vld [vmem:[#allocation7 + $0x10] sm:$0xf]  ;;  %v584_v24 = vld [vmem:[#allocation7 + $0x14] sm:$0xf0] }
  0x29   :  { %393 = vmatpush.bf16.msrb.mxu1 %v560_v54  ;;  %368 = vmatpush.bf16.msra.mxu3 %v548_v60  ;;  %v536_v22 = vor.u32 %v601_v18, %v533_v19  ;;  %v523_v25 = vld [vmem:[#allocation7 + $0x90] sm:$0xf]  ;;  %v460_v26 = vor.u32 %v584_v24, %v459_v23  ;;  %v600_v27 = vld [vmem:[#allocation7 + $0x94] sm:$0xf0]  ;;  %v583_v28 = vld [vmem:[#allocation7 + $0x14] sm:$0xf] }
  0x2a   :  { %v461_v29 = vld [vmem:[#allocation7 + $0x18] sm:$0xf0]  ;;  %v524_v30 = vor.u32 %v600_v27, %v523_v25  ;;  %v599_v32 = vld [vmem:[#allocation7 + $0x94] sm:$0xf]  ;;  %v451_v35 = vld [vmem:[#allocation7] sm:$0xf] }
  0x2b   :  { %v464_v31 = vor.u32 %v583_v28, %v461_v29  ;;  %v525_v33 = vld [vmem:[#allocation7 + $0x98] sm:$0xf0]  ;;  %v582_v36 = vld [vmem:[#allocation7 + $0x4] sm:$0xf0]  ;;  %v515_v37 = vld [vmem:[#allocation7 + $0x80] sm:$0xf] }
  0x2c   :  { %381 = vmatpush.bf16.msrb.mxu0 %v488_v63  ;;  %356 = vmatpush.bf16.msra.mxu2 %v476_v5  ;;  %v528_v34 = vor.u32 %v599_v32, %v525_v33  ;;  %v452_v38 = vor.u32 %v582_v36, %v451_v35  ;;  %v598_v39 = vld [vmem:[#allocation7 + $0x84] sm:$0xf0]  ;;  %v581_v40 = vld [vmem:[#allocation7 + $0x4] sm:$0xf]  ;;  %v453_v41 = vld [vmem:[#allocation7 + $0x8] sm:$0xf0] }
  0x2d   :  { %394 = vmatpush.bf16.msrb.mxu1 %v552_v2  ;;  %369 = vmatpush.bf16.msra.mxu3 %v540_v8  ;;  %v516_v42 = vor.u32 %v598_v39, %v515_v37  ;;  %v456_v43 = vor.u32 %v581_v40, %v453_v41  ;;  %v597_v44 = vld [vmem:[#allocation7 + $0x84] sm:$0xf]  ;;  %v517_v45 = vld [vmem:[#allocation7 + $0x88] sm:$0xf0]  ;;  %v94_v47 = vld [vmem:[%s796_s2] sm:$0x3] }
  0x2e   :  { %v520_v46 = vor.u32 %v597_v44, %v517_v45  ;;  %v96_v48 = vperm.slane %v94_v47, 0  ;;  %v97_v49 = vperm.slane %v94_v47, 1  ;;  %v186_v60 = vld [vmem:[#allocation8] sm:$0x3]  ;;  %v406_v4 = vld [vmem:[%s799_s5] sm:$0x3] }
  0x2f   :  { %v189_v61 = vperm.slane %v186_v60, 1  ;;  %v188_v1 = vperm.slane %v186_v60, 0  ;;  %v409_v12 = vperm.slane %v406_v4, 1  ;;  %v619_v19 = vld [vmem:[#allocation2] ss:$0 sm:$0xff]  ;;  %vm422_vm1 = vcmask 7168  }
  0x30   :  { %382 = vmatpush.bf16.msrb.mxu0 %v480_v11  ;;  %357 = vmatpush.bf16.msra.mxu2 %v468_v17  ;;  %v408_v11 = vperm.slane %v406_v4, 0 }
  0x31   :  { %395 = vmatpush.bf16.msrb.mxu1 %v544_v14  ;;  %370 = vmatpush.bf16.msra.mxu3 %v532_v20 }
  0x34   :  { %383 = vmatpush.bf16.msrb.mxu0 %v472_v21  ;;  %358 = vmatpush.bf16.msra.mxu2 %v460_v26 }
  0x35   :  { %396 = vmatpush.bf16.msrb.mxu1 %v536_v22  ;;  %371 = vmatpush.bf16.msra.mxu3 %v524_v30 }
  0x38   :  { %384 = vmatpush.bf16.msrb.mxu0 %v464_v31  ;;  %359 = vmatpush.bf16.msra.mxu2 %v452_v38 }
  0x39   :  { %397 = vmatpush.bf16.msrb.mxu1 %v528_v34  ;;  %372 = vmatpush.bf16.msra.mxu3 %v516_v42 }
  0x3c   :  { %385 = vmatpush.bf16.msrb.mxu0 %v456_v43 }
  0x3d   :  { %398 = vmatpush.bf16.msrb.mxu1 %v520_v46 }
  0x9c   :  { %v133_v50 = vpop.f32.mrf.mxu0 }
  0x9d   :  { %v134_v51 = vadd.f32 %v133_v50, %v96_v48 }
  0x9f   :  { %v146_v52 = vpop.f32.mrf.mxu1  ;;  %v150_v54 = vmax.f32 %v134_v51, 0.0 }
  0xa0   :  { %v147_v53 = vadd.f32 %v146_v52, %v97_v49 }
  0xa1   :  { %v152_v56 = vpack.c.bf16 %v150_v54, %v150_v54 }
  0xa2   :  { %v151_v55 = vmax.f32 %v147_v53, 0.0 }
  0xa3   :  { %360 = vmatmul.bf16.vlgmr.msra.gmra.mxu2 %v152_v56  ;;  %386 = vmatmul.bf16.vlgmr.msrb.gmra.mxu0 %v152_v56 }
  0xa4   :  { %v153_v57 = vpack.c.bf16 %v151_v55, %v151_v55  ;;  %v135_v58 = vpop.f32.mrf.mxu0 }
  0xa6   :  { %373 = vmatmul.bf16.vlgmr.msra.gmra.mxu3 %v153_v57  ;;  %399 = vmatmul.bf16.vlgmr.msrb.gmra.mxu1 %v153_v57 }
  0xa7   :  { %v148_v59 = vpop.f32.mrf.mxu1 }
 0x120   :  { %v387_v62 = vpop.f32.mrf.mxu0 }
 0x121   :  { %v388_v63 = vadd.f32 %v387_v62, %v189_v61 }
 0x123   :  { %v400_v0 = vpop.f32.mrf.mxu1 }
 0x124   :  { %v401_v2 = vadd.f32 %v400_v0, %v388_v63 }
 0x126   :  { %v361_v3 = vpop.f32.mrf.mxu2  ;;  %v405_v8 = vmax.f32 %v401_v2, 0.0 }
 0x127   :  { %v362_v5 = vadd.f32 %v361_v3, %v188_v1 }
 0x128   :  { %v389_v7 = vpop.f32.mrf.mxu0  ;;  %v413_v15 = vmul.f32 %v409_v12, %v405_v8 }
 0x129   :  { %v374_v6 = vpop.f32.mrf.mxu3 }
 0x12a   :  { %v375_v9 = vadd.f32 %v374_v6, %v362_v5 }
 0x12b   :  { %v402_v10 = vpop.f32.mrf.mxu1 }
 0x12c   :  { %v404_v13 = vmax.f32 %v375_v9, 0.0 }
 0x12e   :  { %v412_v14 = vmul.f32 %v408_v11, %v404_v13  ;;  %v363_v16 = vpop.f32.mrf.mxu2 }
 0x130   :  { %v414_v18 = vadd.f32 %v413_v15, %v412_v14 }
 0x131   :  { %v376_v17 = vpop.f32.mrf.mxu3 }
 0x132   :  { %415 = vadd.xlane.f32.xlu0 %v414_v18 }
 0x1a5   :  { %v416_v20 = vpop.xlane.xlu0 %415 }
 0x1a6   :  { %v421_v21 = vadd.f32 %v619_v19, %v416_v20 }
 0x1a8   :  { %423 = vst.msk [vmem:[%s801_s7] sm:$0xff] %vm422_vm1, %v421_v21 }
 0x1a9   :  { %428 = vsyncpa [#allocation4], 1 }
 0x1aa   :  { %429 = vsyncpa [#allocation6], 1 }
 0x1ab   :  { %430 = vsyncpa [#allocation9], 1 }

</bundles_post_ra>
